<compile_context>
chip_gen: v7x
topology: tpu7x:2x2x1
jax: 0.10.0
libtpu: 0.0.40
codegen_flags: <defaults>
</compile_context>

<pallas_src>
import jax
import jax.numpy as jnp
from jax.experimental import pallas as pl
from jax.experimental.pallas import tpu as pltpu


# ----------------------------------------------------------------------------
# Fused kernel: per batch block of Bb samples
#   y[b]   = W @ x[b]                      (VPU broadcast-FMAs, C is tiny)
#   out[b] = c_in[b] * y[b] + bias_eff[b]  (bias_eff already folds bias + CFG)
# ----------------------------------------------------------------------------
def _cfg_denoiser_kernel(x_ref, cin_ref, beff_ref, w_ref, o_ref):
    # x_ref:    [Bb, C, HW]  latents, HW lane-dense (multiple of 128)
    # cin_ref:  [Bb, 1, 1]   per-sample input scale 1/sqrt(sigma^2 + 1)
    # beff_ref: [Bb, C, 1]   per-sample effective bias (bias + CFG-combined proj)
    # w_ref:    [C, C]       1x1 channel-mixing weight (out_ch, in_ch)
    x = x_ref[...]
    w = w_ref[...]
    C = x.shape[1]

    # Channel contraction as C unrolled broadcast-FMAs on the VPU.  w[:, k] is
    # already sublane-aligned (column slice), broadcast along batch and lanes.
    y = x[:, 0:1, :] * w[:, 0][None, :, None]
    for k in range(1, C):
        y = y + x[:, k:k + 1, :] * w[:, k][None, :, None]

    # One broadcast FMA + a single lane-dense store per tile.
    o_ref[...] = (y * cin_ref[...] + beff_ref[...]).astype(o_ref.dtype)


def _pick_batch_block(B, target_samples=256):
    """Largest divisor of B that is <= target_samples and, when B >= 2, leaves
    at least 2 grid steps so both v7x TensorCores are used."""
    cap = max(1, min(target_samples, B if B < 2 else B // 2))
    bb = 1
    for d in range(1, cap + 1):
        if B % d == 0:
            bb = d
    return bb


# ----------------------------------------------------------------------------
# CFGDenoiser.forward
# ----------------------------------------------------------------------------
@jax.jit
def cfg_denoiser_forward(x, sigma, uncond, cond, params, cond_scale):
    # x: [B, C, H, W] (NCHW) ; sigma: [B] ; uncond/cond: [B, D]
    # cond_scale: runtime scalar (traced -> no recompile when it changes)
    B, C, H, W = x.shape
    HW = H * W
    w, b, wc = params

    # Tiny XLA precompute (independent of x):
    #   c_in     = 1/sqrt(sigma^2 + 1)
    #   v        = uncond + (cond - uncond) * cond_scale      (CFG combine)
    #   bias_eff = bias + Wc @ v                              (per sample, per channel)
    c_in = (1.0 / jnp.sqrt(sigma * sigma + 1.0)).reshape(B, 1, 1)
    v = uncond + (cond - uncond) * cond_scale                  # [B, D]
    bias_eff = (b[:, 0][None, :] + v @ wc.T).reshape(B, C, 1)  # [B, C, 1]

    x_r = x.reshape(B, C, HW)   # spatial axis lane-dense

    Bb = _pick_batch_block(B)
    grid = (B // Bb,)

    out = pl.pallas_call(
        _cfg_denoiser_kernel,
        out_shape=jax.ShapeDtypeStruct((B, C, HW), x.dtype),
        grid=grid,
        in_specs=[
            pl.BlockSpec((Bb, C, HW), lambda i: (i, 0, 0)),   # x block
            pl.BlockSpec((Bb, 1, 1), lambda i: (i, 0, 0)),    # c_in block
            pl.BlockSpec((Bb, C, 1), lambda i: (i, 0, 0)),    # bias_eff block
            pl.BlockSpec((C, C), lambda i: (0, 0)),           # W (resident)
        ],
        out_specs=pl.BlockSpec((Bb, C, HW), lambda i: (i, 0, 0)),
        compiler_params=pltpu.CompilerParams(
            dimension_semantics=("parallel",)),
    )(x_r, c_in, bias_eff, w)

    return out.reshape(B, C, H, W)


# ----------------------------------------------------------------------------
# Pure-JAX reference implementing the literal PyTorch semantics
# (cat -> inner model on 2B batch -> chunk(2) -> CFG combine).
# ----------------------------------------------------------------------------
def _reference(x, sigma, uncond, cond, params, cond_scale):
    B, C, H, W = x.shape
    w, b, wc = params
    x_in = jnp.concatenate([x, x], axis=0).reshape(2 * B, C, H * W)
    sigma_in = jnp.concatenate([sigma, sigma], axis=0)
    cond_in = jnp.concatenate([uncond, cond], axis=0)

    c_in = (1.0 / jnp.sqrt(sigma_in ** 2 + 1.0))[:, None, None]
    h = x_in * c_in
    y = jnp.einsum("oc,nch->noh", w, h) + b[None, :, :] \
        + jnp.einsum("od,nd->no", wc, cond_in)[:, :, None]
    u, c = jnp.split(y, 2, axis=0)
    out = u + (c - u) * cond_scale
    return out.reshape(B, C, H, W)


if __name__ == "__main__":
    B, C, H, W, D = 2, 4, 16, 16, 32
    key = jax.random.PRNGKey(0)
    k1, k2, k3, k4, k5, k6, k7 = jax.random.split(key, 7)

    # Inputs
    x = jax.random.normal(k1, (B, C, H, W), dtype=jnp.float32)
    sigma = jax.random.uniform(k2, (B,), dtype=jnp.float32, minval=0.5, maxval=3.0)
    uncond = jax.random.normal(k3, (B, D), dtype=jnp.float32)
    cond = jax.random.normal(k4, (B, D), dtype=jnp.float32)
    cond_scale = 7.5

    # Deterministic synthetic inner-model parameters
    # TODO(synk): the wrapped inner_model is an arbitrary nn.Module in the spec
    # (e.g. a UNet); it is represented here by a deterministic linear denoiser.
    w = jax.random.normal(k5, (C, C), dtype=jnp.float32) * 0.5     # 1x1 channel mix
    b = jax.random.normal(k6, (C, 1), dtype=jnp.float32) * 0.1     # bias
    wc = jax.random.normal(k7, (C, D), dtype=jnp.float32) * 0.1    # cond projection
    params = (w, b, wc)

    out = cfg_denoiser_forward(x, sigma, uncond, cond, params, cond_scale)
    out = jax.block_until_ready(out)

    ref = _reference(x, sigma, uncond, cond, params, cond_scale)
    assert out.shape == (B, C, H, W)
    assert jnp.allclose(out, ref, atol=1e-4, rtol=1e-4)

    print("KERNEL_OK")
</pallas_src>

<mosaic_0001>
module attributes {stable_mosaic.version = 11 : i64} {
  func.func @_cfg_denoiser_kernel(%arg0: i32, %arg1: memref<1x4x256xf32, #tpu.memory_space<vmem>>, %arg2: memref<1x1x1xf32, #tpu.memory_space<vmem>>, %arg3: memref<1x4x1xf32, #tpu.memory_space<vmem>>, %arg4: memref<4x4xf32, #tpu.memory_space<vmem>>, %arg5: memref<1x4x256xf32, #tpu.memory_space<vmem>>) attributes {dimension_semantics = [#tpu.dimension_semantics<parallel>], iteration_bounds = array<i64: 2>, scalar_prefetch = 0 : i64, scratch_operands = 0 : i64, tpu.core_type = #tpu.core_type<tc>, window_params = [{transform_indices = @transform_0, window_bounds = array<i64: 1, 4, 256>}, {transform_indices = @transform_1, window_bounds = array<i64: 1, 1, 1>}, {transform_indices = @transform_2, window_bounds = array<i64: 1, 4, 1>}, {pipeline_mode = #tpu.pipeline_mode<synchronous>, transform_indices = @transform_3, window_bounds = array<i64: 4, 4>}, {transform_indices = @transform_4, window_bounds = array<i64: 1, 4, 256>}]} {
    %c0 = arith.constant 0 : index
    %c0_0 = arith.constant 0 : index
    %c0_1 = arith.constant 0 : index
    %0 = vector.load %arg1[%c0, %c0_0, %c0_1] : memref<1x4x256xf32, #tpu.memory_space<vmem>>, vector<1x4x256xf32>
    %c0_2 = arith.constant 0 : index
    %c0_3 = arith.constant 0 : index
    %1 = vector.load %arg4[%c0_2, %c0_3] : memref<4x4xf32, #tpu.memory_space<vmem>>, vector<4x4xf32>
    %2 = vector.extract_strided_slice %0 {offsets = [0, 0, 0], sizes = [1, 1, 256], strides = [1, 1, 1]} : vector<1x4x256xf32> to vector<1x1x256xf32>
    %3 = vector.extract_strided_slice %1 {offsets = [0, 0], sizes = [4, 1], strides = [1, 1]} : vector<4x4xf32> to vector<4x1xf32>
    %4 = vector.shape_cast %3 : vector<4x1xf32> to vector<4xf32>
    %5 = vector.shape_cast %4 : vector<4xf32> to vector<1x4x1xf32>
    %6 = vector.broadcast %2 : vector<1x1x256xf32> to vector<1x4x256xf32>
    %7 = vector.broadcast %5 : vector<1x4x1xf32> to vector<1x4x256xf32>
    %8 = arith.mulf %6, %7 : vector<1x4x256xf32>
    %9 = vector.extract_strided_slice %0 {offsets = [0, 1, 0], sizes = [1, 1, 256], strides = [1, 1, 1]} : vector<1x4x256xf32> to vector<1x1x256xf32>
    %10 = vector.extract_strided_slice %1 {offsets = [0, 1], sizes = [4, 1], strides = [1, 1]} : vector<4x4xf32> to vector<4x1xf32>
    %11 = vector.shape_cast %10 : vector<4x1xf32> to vector<4xf32>
    %12 = vector.shape_cast %11 : vector<4xf32> to vector<1x4x1xf32>
    %13 = vector.broadcast %9 : vector<1x1x256xf32> to vector<1x4x256xf32>
    %14 = vector.broadcast %12 : vector<1x4x1xf32> to vector<1x4x256xf32>
    %15 = arith.mulf %13, %14 : vector<1x4x256xf32>
    %16 = arith.addf %8, %15 : vector<1x4x256xf32>
    %17 = vector.extract_strided_slice %0 {offsets = [0, 2, 0], sizes = [1, 1, 256], strides = [1, 1, 1]} : vector<1x4x256xf32> to vector<1x1x256xf32>
    %18 = vector.extract_strided_slice %1 {offsets = [0, 2], sizes = [4, 1], strides = [1, 1]} : vector<4x4xf32> to vector<4x1xf32>
    %19 = vector.shape_cast %18 : vector<4x1xf32> to vector<4xf32>
    %20 = vector.shape_cast %19 : vector<4xf32> to vector<1x4x1xf32>
    %21 = vector.broadcast %17 : vector<1x1x256xf32> to vector<1x4x256xf32>
    %22 = vector.broadcast %20 : vector<1x4x1xf32> to vector<1x4x256xf32>
    %23 = arith.mulf %21, %22 : vector<1x4x256xf32>
    %24 = arith.addf %16, %23 : vector<1x4x256xf32>
    %25 = vector.extract_strided_slice %0 {offsets = [0, 3, 0], sizes = [1, 1, 256], strides = [1, 1, 1]} : vector<1x4x256xf32> to vector<1x1x256xf32>
    %26 = vector.extract_strided_slice %1 {offsets = [0, 3], sizes = [4, 1], strides = [1, 1]} : vector<4x4xf32> to vector<4x1xf32>
    %27 = vector.shape_cast %26 : vector<4x1xf32> to vector<4xf32>
    %28 = vector.shape_cast %27 : vector<4xf32> to vector<1x4x1xf32>
    %29 = vector.broadcast %25 : vector<1x1x256xf32> to vector<1x4x256xf32>
    %30 = vector.broadcast %28 : vector<1x4x1xf32> to vector<1x4x256xf32>
    %31 = arith.mulf %29, %30 : vector<1x4x256xf32>
    %32 = arith.addf %24, %31 : vector<1x4x256xf32>
    %c0_4 = arith.constant 0 : index
    %c0_5 = arith.constant 0 : index
    %c0_6 = arith.constant 0 : index
    %33 = vector.load %arg2[%c0_4, %c0_5, %c0_6] : memref<1x1x1xf32, #tpu.memory_space<vmem>>, vector<1x1x1xf32>
    %34 = vector.broadcast %33 : vector<1x1x1xf32> to vector<1x4x256xf32>
    %35 = arith.mulf %32, %34 : vector<1x4x256xf32>
    %c0_7 = arith.constant 0 : index
    %c0_8 = arith.constant 0 : index
    %c0_9 = arith.constant 0 : index
    %36 = vector.load %arg3[%c0_7, %c0_8, %c0_9] : memref<1x4x1xf32, #tpu.memory_space<vmem>>, vector<1x4x1xf32>
    %37 = vector.broadcast %36 : vector<1x4x1xf32> to vector<1x4x256xf32>
    %38 = arith.addf %35, %37 : vector<1x4x256xf32>
    %c0_10 = arith.constant 0 : index
    %c0_11 = arith.constant 0 : index
    %c0_12 = arith.constant 0 : index
    %39 = vector.load %arg5[%c0_10, %c0_11, %c0_12] : memref<1x4x256xf32, #tpu.memory_space<vmem>>, vector<1x4x256xf32>
    tpu.vector_store %arg5[%c0_10, %c0_11, %c0_12], %38 {strides = array<i32>} : memref<1x4x256xf32, #tpu.memory_space<vmem>>, vector<1x4x256xf32>,
    return
  }
  func.func @transform_0(%arg0: i32) -> (i32, i32, i32) {
    %c0_i32 = arith.constant 0 : i32
    %c0_i32_0 = arith.constant 0 : i32
    %c0_i32_1 = arith.constant 0 : i32
    return %arg0, %c0_i32, %c0_i32_0 : i32, i32, i32
  }
  func.func @transform_1(%arg0: i32) -> (i32, i32, i32) {
    %c0_i32 = arith.constant 0 : i32
    %c0_i32_0 = arith.constant 0 : i32
    %c0_i32_1 = arith.constant 0 : i32
    return %arg0, %c0_i32, %c0_i32_0 : i32, i32, i32
  }
  func.func @transform_2(%arg0: i32) -> (i32, i32, i32) {
    %c0_i32 = arith.constant 0 : i32
    %c0_i32_0 = arith.constant 0 : i32
    %c0_i32_1 = arith.constant 0 : i32
    return %arg0, %c0_i32, %c0_i32_0 : i32, i32, i32
  }
  func.func @transform_3(%arg0: i32) -> (i32, i32) {
    %c0_i32 = arith.constant 0 : i32
    %c0_i32_0 = arith.constant 0 : i32
    %c0_i32_1 = arith.constant 0 : i32
    return %c0_i32, %c0_i32_0 : i32, i32
  }
  func.func @transform_4(%arg0: i32) -> (i32, i32, i32) {
    %c0_i32 = arith.constant 0 : i32
    %c0_i32_0 = arith.constant 0 : i32
    %c0_i32_1 = arith.constant 0 : i32
    return %arg0, %c0_i32, %c0_i32_0 : i32, i32, i32
  }
}

</mosaic_0001>

<bundles_post_ra>
// kernel: cfg_denoiser_forward.1
= control target key start
LH: loop header
LB: loop body
LE: loop exit
PB: predicated region body
PF: predicated region fallthrough
CT: control target
= control target key end

     0   :  { %s506_s15 = smov 0   ;;  %s541_s0 = inlined_call_operand.vmem [shape: f32[2,4,256], index: 0, kind: input, shape index: {}]   ;;  %s542_s1 = inlined_call_operand.vmem [shape: f32[2,1,1], index: 1, kind: input, shape index: {}]   ;;  %s543_s2 = inlined_call_operand.vmem [shape: f32[2,4,1], index: 2, kind: input, shape index: {}]   ;;  %s544_s3 = inlined_call_operand.vmem [shape: f32[4,4], index: 3, kind: input, shape index: {}]   ;;  %s545_s4 = inlined_call_operand.vmem [shape: f32[2,4,256], index: 4, kind: output, shape index: {}]  }
   0x1 LB: > { %s436_s16 = sadd.s32 4294967295, %s475_s15   ;;  %p440_p0 = scmp.ge.s32.totalorder %s475_s15, 1  ;;  %s475_s15 = sphi %s506_s15, %s14_s15  }
   0x2   : > { %p179_p1 = scmp.lt.s32.totalorder %s475_s15, 3 }
   0x4   : > { %p180_p2 = pnand %p440_p0, %p179_p1 }
   0x5   : > { %v230_v0 = vld [vmem:[%s544_s3] sm:$0xf] (!%p180_p2)  ;;  %v477_v1 = vmov (!%p180_p2), 0   ;;  %v478_v2 = vmov (!%p180_p2), 2   ;;  %p212_p3 = scmp.lt.s32.totalorder (!%p180_p2), %s436_s16, 1  ;;  %v479_v3 = vmov (!%p180_p2), 1   ;;  %v232_v7 = vlaneseq (!%p180_p2) }
   0x6   : > { %183 = sbr.rel (%p180_p2) target bundleno = 155 (0x9b), region = 36  ;;  %463 = vset.pattern.permute.xlu0 (!%p180_p2), %v477_v1  ;;  %465 = vset.pattern.permute.xlu1 (!%p180_p2), %v478_v2  ;;  %v480_v4 = vmov (!%p180_p2), 3  }
   0x7   : > { %252 = vperm.xlu0 (!%p180_p2), %463, %v230_v0   ;;  %302 = vperm.xlu1 (!%p180_p2), %465, %v230_v0   ;;  %v233_v8 = vshrl.u32 (!%p180_p2), %v232_v7, 7 }
   0x9   : > { %v234_v9 = vsub.s32 (!%p180_p2), 0, %v233_v8  ;;  %v238_v10 = vsub.s32 (!%p180_p2), 4, %v233_v8  ;;  %v259_v11 = vsub.s32 (!%p180_p2), 1, %v233_v8  ;;  %v263_v12 = vsub.s32 (!%p180_p2), 5, %v233_v8 }
   0xa   : > { %v285_v14 = vsub.s32 (!%p180_p2), 2, %v233_v8  ;;  %v289_v15 = vsub.s32 (!%p180_p2), 6, %v233_v8  ;;  %v311_v16 = vsub.s32 (!%p180_p2), 3, %v233_v8  ;;  %v315_v17 = vsub.s32 (!%p180_p2), 7, %v233_v8 }
   0xb   : > { %464 = vset.pattern.permute.xlu0 (!%p180_p2), %v479_v3  ;;  %466 = vset.pattern.permute.xlu1 (!%p180_p2), %v480_v4 }
   0xc   : > { %276 = vperm.xlu0 (!%p180_p2), %464, %v230_v0   ;;  %328 = vperm.xlu1 (!%p180_p2), %466, %v230_v0  }
   0xd   : > { %s547_s16 = smov (!%p212_p3, %s436_s16), 1 }
   0xe   : > { %s219_s21 = scalar_lea.vmem %s542_s1, %s547_s16  ;;  %s443_s22 = sshll.u32 %s547_s16, 2 }
   0xf   : > { %s223_s25 = scalar_lea.vmem %s543_s2, %s443_s22  ;;  %v446_v5 = vld [vmem:[%s219_s21] ss:$0 sm:$0xff]  ;;  %s449_s26 = sshll.u32 %s547_s16, 3 }
  0x10   : > { %v347_v6 = vld [vmem:[%s223_s25] sm:$0xf]  ;;  %467 = vset.pattern.permute.xlu1 %v477_v1  ;;  %468 = vset.pattern.permute.xlu0 %v477_v1  ;;  %s216_s29 = scalar_lea.vmem %s541_s0, %s449_s26  ;;  %s228_s6 = scalar_lea.vmem %s545_s4, %s449_s26 }
  0x11   : > { %342 = vperm.xlu1 %467, %v446_v5   ;;  %350 = vperm.xlu0 %468, %v347_v6   ;;  %v229_v13 = vld [vmem:[%s216_s29] sm:$0xff] }
  0x12   : > { %v235_v18 = vrot.slane %v229_v13, %v234_v9  ;;  %v239_v19 = vrot.slane %v229_v13, %v238_v10  ;;  %v260_v20 = vrot.slane %v229_v13, %v259_v11  ;;  %v264_v21 = vrot.slane %v229_v13, %v263_v12 }
  0x13   : > { %v286_v22 = vrot.slane %v229_v13, %v285_v14  ;;  %v290_v23 = vrot.slane %v229_v13, %v289_v15  ;;  %v312_v26 = vrot.slane %v229_v13, %v311_v16  ;;  %v316_v27 = vrot.slane %v229_v13, %v315_v17 }
  0x14   : > { %v245_v28 = vrot.slane %v235_v18, %v234_v9  ;;  %v249_v29 = vrot.slane %v239_v19, %v234_v9  ;;  %v270_v30 = vrot.slane %v260_v20, %v259_v11  ;;  %v274_v31 = vrot.slane %v264_v21, %v259_v11 }
  0x15   : > { %v296_v32 = vrot.slane %v286_v22, %v285_v14  ;;  %v300_v33 = vrot.slane %v290_v23, %v285_v14  ;;  %v322_v34 = vrot.slane %v312_v26, %v311_v16  ;;  %v326_v35 = vrot.slane %v316_v27, %v311_v16 }
  0x86   : > { %v253_v24 = vpop.permute.xlu0 %252  ;;  %v303_v25 = vpop.permute.xlu1 %302 }
  0x87   : > { %v255_v38 = vmul.f32 %v253_v24, %v245_v28  ;;  %v256_v39 = vmul.f32 %v253_v24, %v249_v29  ;;  %v305_v42 = vmul.f32 %v303_v25, %v296_v32  ;;  %v306_v43 = vmul.f32 %v303_v25, %v300_v33 }
  0x8b   : > { %v277_v36 = vpop.permute.xlu0 %276  ;;  %v329_v37 = vpop.permute.xlu1 %328 }
  0x8c   : > { %v279_v40 = vmul.f32 %v277_v36, %v270_v30  ;;  %v280_v41 = vmul.f32 %v277_v36, %v274_v31  ;;  %v331_v46 = vmul.f32 %v329_v37, %v322_v34  ;;  %v332_v47 = vmul.f32 %v329_v37, %v326_v35 }
  0x8e   : > { %v281_v44 = vadd.f32 %v279_v40, %v255_v38  ;;  %v282_v45 = vadd.f32 %v280_v41, %v256_v39 }
  0x90   : > { %v307_v48 = vadd.f32 %v305_v42, %v281_v44  ;;  %v308_v49 = vadd.f32 %v306_v43, %v282_v45  ;;  %v343_v50 = vpop.permute.xlu1 %342  ;;  %v351_v53 = vpop.permute.xlu0 %350 }
  0x92   : > { %v333_v51 = vadd.f32 %v331_v46, %v307_v48  ;;  %v334_v52 = vadd.f32 %v332_v47, %v308_v49 }
  0x94   : > { %v345_v54 = vmul.f32 %v343_v50, %v333_v51  ;;  %v346_v55 = vmul.f32 %v343_v50, %v334_v52 }
  0x96   : > { %v353_v56 = vadd.f32 %v351_v53, %v345_v54  ;;  %v354_v57 = vadd.f32 %v351_v53, %v346_v55 }
  0x98   : > { %v357_v58 = vcombine.low %v353_v56, %v354_v57 }
  0x9a   : > { %359 = vst [vmem:[%s228_s6] sm:$0xff] %v357_v58 }
  0x9b PF: > { %s14_s15 = sadd.s32 1, %s475_s15  }
  0x9c   : > { %p11_p4 = scmp.ge.s32.totalorder %s14_s15, 4  }
  0x9e   :  { %13 = sbr.rel (!%p11_p4) target bundleno = 1 (0x1), region = 72 }

</bundles_post_ra>
